<compile_context>
chip_gen: v7x
topology: tpu7x:2x2x1
jax: 0.10.0
libtpu: 0.0.40
codegen_flags: <defaults>
</compile_context>

<pallas_src>
import functools

import jax
import jax.numpy as jnp
from jax.experimental import pallas as pl
from jax.experimental.pallas import tpu as pltpu


# ---------------------------------------------------------------------------
# Fused kernel, per batch tile of TB rows:
#   x      = logits (ragged tail rows forced to 0 so exp stays finite)
#   e      = exp(x - rowmax)
#   r      = e @ W          (MXU;  r[:,0] = sum(e),  r[:,1] = sum(e*ages))
#   mean   = r[:,1] / r[:,0]
#   out    = (mean - target)^2   (0 on invalid tail rows)
# ---------------------------------------------------------------------------
def _dex_l2_kernel(logits_ref, target_ref, w_ref, out_ref, *, n_rows, masked):
    tb = logits_ref.shape[0]
    x = logits_ref[...]                                           # (TB, A) f32

    if masked:
        row = (pl.program_id(0) * tb
               + jax.lax.broadcasted_iota(jnp.int32, (tb, 1), 0))  # (TB, 1)
        valid = row < n_rows
        # Neutralize garbage tail rows BEFORE max/exp (exp(garbage) may be inf/NaN).
        x = jnp.where(valid, x, 0.0)

    m = jnp.max(x, axis=-1, keepdims=True)                        # (TB, 1)  XLU
    e = jnp.exp(x - m)                                            # (TB, A)  EUP

    # MXU reduction: col 0 of W is ones, col 1 is the age vector. Keep e in f32.
    r = jnp.dot(e, w_ref[...], preferred_element_type=jnp.float32)  # (TB, 128)
    denom = r[:, 0:1]                                             # sum(e)
    num = r[:, 1:2]                                               # sum(e*ages)

    mean_pred = num / denom                                       # (TB, 1)
    diff = mean_pred - target_ref[...]                            # (TB, 1)
    sq = diff * diff

    if masked:
        sq = jnp.where(valid, sq, 0.0)
    out_ref[...] = sq


# ---------------------------------------------------------------------------
# Wrapper: layout plumbing + pallas_call.
# ---------------------------------------------------------------------------
def dex_l2_loss(logits, target, start_age, end_age, *, block_n=2048):
    n, a = logits.shape
    assert a == end_age - start_age + 1, (a, start_age, end_age)

    logits = logits.astype(jnp.float32)
    target = target.astype(jnp.float32).reshape(n, 1)

    # Resident MXU reduction weight: (A, 128), col 0 = ones, col 1 = ages.
    ages = jnp.arange(start_age, end_age + 1, dtype=jnp.float32)
    w = jnp.zeros((a, 128), jnp.float32)
    w = w.at[:, 0].set(1.0).at[:, 1].set(ages)

    # Batch tile: multiple of 8 sublanes, capped at block_n (VMEM friendly).
    tb = min(block_n, -(-n // 8) * 8)
    tb = max(8, (tb // 8) * 8)
    grid = (pl.cdiv(n, tb),)
    masked = (n % tb) != 0     # ragged tail -> in-kernel row-validity mask

    sq = pl.pallas_call(
        functools.partial(_dex_l2_kernel, n_rows=n, masked=masked),
        out_shape=jax.ShapeDtypeStruct((n, 1), jnp.float32),
        grid_spec=pltpu.PrefetchScalarGridSpec(
            num_scalar_prefetch=0,
            grid=grid,
            in_specs=[
                pl.BlockSpec((tb, a), lambda i: (i, 0)),    # logits tile
                pl.BlockSpec((tb, 1), lambda i: (i, 0)),    # target tile
                pl.BlockSpec((a, 128), lambda i: (0, 0)),   # ones/ages weight
            ],
            out_specs=pl.BlockSpec((tb, 1), lambda i: (i, 0)),  # per-row sq err
        ),
        compiler_params=pltpu.CompilerParams(
            dimension_semantics=("parallel",)),             # independent tiles
        cost_estimate=pl.CostEstimate(
            flops=n * (2 * a * 128 + 6 * a),
            transcendentals=n * a,
            bytes_accessed=4 * n * a + 8 * n + 4 * a * 128),
    )(logits, target, w)

    # Final mean over the batch (single f32 pass; also fixes long-running-sum
    # accuracy vs. a scalar accumulator).
    return jnp.sum(sq[:, 0]) / n


# ---------------------------------------------------------------------------
# Pure-JAX reference (same math as the PyTorch module, for correctness check).
# ---------------------------------------------------------------------------
def _reference(logits, target, start_age, end_age):
    p = jax.nn.softmax(logits.astype(jnp.float32), axis=1)
    a = jnp.arange(start_age, end_age + 1, dtype=jnp.float32)
    mean = jnp.sum(p * a[None, :], axis=1)
    return jnp.mean((mean - target.astype(jnp.float32)) ** 2)


if __name__ == "__main__":
    key = jax.random.PRNGKey(0)
    k1, k2, k3, k4 = jax.random.split(key, 4)

    start_age, end_age = 0, 100            # A = 101 age bins
    a_dim = end_age - start_age + 1

    # case 1: batch divisible by the tile -> multi-step "parallel" grid
    n1 = 32
    logits1 = jax.random.normal(k1, (n1, a_dim), jnp.float32)
    target1 = jax.random.uniform(k2, (n1,), jnp.float32,
                                 minval=float(start_age), maxval=float(end_age))
    loss1 = dex_l2_loss(logits1, target1, start_age, end_age, block_n=8)
    loss1 = jax.block_until_ready(loss1)
    ref1 = _reference(logits1, target1, start_age, end_age)
    assert loss1.shape == (), loss1.shape
    assert jnp.allclose(loss1, ref1, rtol=2e-4, atol=1e-3), \
        (float(loss1), float(ref1))

    # case 2: ragged batch, small tile -> partial last block, in-kernel mask
    n2 = 30
    logits2 = jax.random.normal(k3, (n2, a_dim), jnp.float32)
    target2 = jax.random.uniform(k4, (n2,), jnp.float32,
                                 minval=float(start_age), maxval=float(end_age))
    loss2 = dex_l2_loss(logits2, target2, start_age, end_age, block_n=8)
    loss2 = jax.block_until_ready(loss2)
    ref2 = _reference(logits2, target2, start_age, end_age)
    assert jnp.allclose(loss2, ref2, rtol=2e-4, atol=1e-3), \
        (float(loss2), float(ref2))

    # case 3: default (large) tile with tb > N -> single partial block
    loss3 = dex_l2_loss(logits2, target2, start_age, end_age)
    loss3 = jax.block_until_ready(loss3)
    assert jnp.allclose(loss3, ref2, rtol=2e-4, atol=1e-3), \
        (float(loss3), float(ref2))

    # TODO(synk): the PyTorch module's `.cuda()` device transfers have no Pallas
    # equivalent and are irrelevant on TPU; only the loss math is reproduced.
    print("KERNEL_OK")
</pallas_src>

<mosaic_0001>
module attributes {stable_mosaic.version = 11 : i64} {
  func.func @_dex_l2_kernel(%arg0: i32, %arg1: memref<8x101xf32, #tpu.memory_space<vmem>>, %arg2: memref<8x1xf32, #tpu.memory_space<vmem>>, %arg3: memref<101x128xf32, #tpu.memory_space<vmem>>, %arg4: memref<8x1xf32, #tpu.memory_space<vmem>>) attributes {dimension_semantics = [#tpu.dimension_semantics<parallel>], iteration_bounds = array<i64: 4>, scalar_prefetch = 0 : i64, scratch_operands = 0 : i64, tpu.core_type = #tpu.core_type<tc>, window_params = [{transform_indices = @transform_0, window_bounds = array<i64: 8, 101>}, {transform_indices = @transform_1, window_bounds = array<i64: 8, 1>}, {pipeline_mode = #tpu.pipeline_mode<synchronous>, transform_indices = @transform_2, window_bounds = array<i64: 101, 128>}, {transform_indices = @transform_3, window_bounds = array<i64: 8, 1>}]} {
    %c0 = arith.constant 0 : index
    %c0_0 = arith.constant 0 : index
    %0 = vector.load %arg1[%c0, %c0_0] : memref<8x101xf32, #tpu.memory_space<vmem>>, vector<8x101xf32>
    %cst = arith.constant dense<0xFF800000> : vector<8xf32>
    %1 = vector.multi_reduction <maximumf>, %0, %cst [1] : vector<8x101xf32> to vector<8xf32>
    %2 = vector.shape_cast %1 : vector<8xf32> to vector<8x1xf32>
    %3 = vector.broadcast %2 : vector<8x1xf32> to vector<8x101xf32>
    %4 = arith.subf %0, %3 : vector<8x101xf32>
    %5 = math.exp %4 : vector<8x101xf32>
    %c0_1 = arith.constant 0 : index
    %c0_2 = arith.constant 0 : index
    %6 = vector.load %arg3[%c0_1, %c0_2] : memref<101x128xf32, #tpu.memory_space<vmem>>, vector<101x128xf32>
    %cst_3 = arith.constant dense<0.000000e+00> : vector<8x128xf32>
    %7 = tpu.matmul %5, %6, %cst_3 {dimension_numbers = #tpu.dot_dimension_numbers<[1], [0], [0], [1], [0, 0, 1, 1], [], []>} : vector<8x101xf32>, vector<101x128xf32>, vector<8x128xf32> -> vector<8x128xf32>
    %8 = vector.extract_strided_slice %7 {offsets = [0, 0], sizes = [8, 1], strides = [1, 1]} : vector<8x128xf32> to vector<8x1xf32>
    %9 = vector.extract_strided_slice %7 {offsets = [0, 1], sizes = [8, 1], strides = [1, 1]} : vector<8x128xf32> to vector<8x1xf32>
    %10 = arith.divf %9, %8 : vector<8x1xf32>
    %c0_4 = arith.constant 0 : index
    %c0_5 = arith.constant 0 : index
    %11 = vector.load %arg2[%c0_4, %c0_5] : memref<8x1xf32, #tpu.memory_space<vmem>>, vector<8x1xf32>
    %12 = arith.subf %10, %11 : vector<8x1xf32>
    %13 = arith.mulf %12, %12 : vector<8x1xf32>
    %c0_6 = arith.constant 0 : index
    %c0_7 = arith.constant 0 : index
    %14 = vector.load %arg4[%c0_6, %c0_7] : memref<8x1xf32, #tpu.memory_space<vmem>>, vector<8x1xf32>
    tpu.vector_store %arg4[%c0_6, %c0_7], %13 {strides = array<i32>} : memref<8x1xf32, #tpu.memory_space<vmem>>, vector<8x1xf32>,
    return
  }
  func.func @transform_0(%arg0: i32) -> (i32, i32) {
    %c0_i32 = arith.constant 0 : i32
    %c0_i32_0 = arith.constant 0 : i32
    return %arg0, %c0_i32 : i32, i32
  }
  func.func @transform_1(%arg0: i32) -> (i32, i32) {
    %c0_i32 = arith.constant 0 : i32
    %c0_i32_0 = arith.constant 0 : i32
    return %arg0, %c0_i32 : i32, i32
  }
  func.func @transform_2(%arg0: i32) -> (i32, i32) {
    %c0_i32 = arith.constant 0 : i32
    %c0_i32_0 = arith.constant 0 : i32
    %c0_i32_1 = arith.constant 0 : i32
    return %c0_i32, %c0_i32_0 : i32, i32
  }
  func.func @transform_3(%arg0: i32) -> (i32, i32) {
    %c0_i32 = arith.constant 0 : i32
    %c0_i32_0 = arith.constant 0 : i32
    return %arg0, %c0_i32 : i32, i32
  }
}

</mosaic_0001>

<bundles_post_ra>
// kernel: tpu_custom_call.1
= control target key start
LH: loop header
LB: loop body
LE: loop exit
PB: predicated region body
PF: predicated region fallthrough
CT: control target
= control target key end

     0   :  { %8 = vsyncpa [#allocation3], 0  ;;  %s565_s12 = smov 0   ;;  %s631_s0 = inlined_call_operand.vmem [shape: f32[32,101], index: 0, kind: input, shape index: {}]   ;;  %s632_s1 = inlined_call_operand.vmem [shape: f32[32,1], index: 1, kind: input, shape index: {}]   ;;  %s633_s2 = inlined_call_operand.hbm [shape: f32[101,128], index: 2, kind: input, shape index: {}]   ;;  %s634_s3 = inlined_call_operand.vmem [shape: f32[32,1], index: 3, kind: output, shape index: {}]  }
   0x1 LB: > { %s571_s13 = sadd.s32 4294967295, %s535_s12   ;;  %p394_p0 = scmp.ge.s32.totalorder %s535_s12, 1  ;;  %s535_s12 = sphi %s565_s12, %s14_s12  }
   0x2   : > { %p118_p1 = scmp.lt.s32.totalorder %s535_s12, 5  ;;  %s537_s14 = smov [#allocation2]  }
   0x3   : > { %s130_s15 = sshll.u32 %s537_s14, 4  ;;  %p635_p3 = scmp.eq.s32.totalorder %s571_s13, 0  ;;  %s131_s15 = int_to_ptr.vmem [resolvable:$true] %s130_s15 }
   0x4   : > { %p575_p2 = pnand %p394_p0, %p118_p1  ;;  %s497_s20 = scalar_lea.hbm %s633_s2, 1664 }
   0x5   : > { %p498_p6 = scmp.ne.s32.totalorder %s633_s2, %s497_s20  ;;  %p504_p10 = scmp.lt.u32.totalorder %s497_s20, %s633_s2 }
   0x6   : > { %s637_s16 = scalar_select %p575_p2, 1, 0 }
   0x7   : > { %p471_p4 = pneg %p575_p2 }
   0x9   : > { %p584_p5 = pnand %p635_p3, %p471_p4 }
   0xb   : > { %p499_p7 = pneg %p584_p5 }
   0xd   : > { %p500_p8 = pnand %p499_p7, %p498_p6 }
   0xf   : > { %p501_p9 = pneg %p500_p8 }
  0x11   : > { %p506_p11 = pnand %p504_p10, %p501_p9 }
  0x13   : > { %509 = shalt.err (!%p506_p11)
}
  0x14   : > { %s510_s25 = scalar_lea.vmem %s131_s15, 1664  ;;  %p518_p1 = scmp.lt.s32.totalorder %s131_s15, %s131_s15 }
  0x15   : > { %p511_p12 = scmp.ne.s32.totalorder %s131_s15, %s510_s25  ;;  %p519_p4 = scmp.lt.s32.totalorder %s510_s25, %s510_s25 }
  0x17   : > { %p513_p13 = pnand %p511_p12, %p499_p7  ;;  %p520_p3 = por %p519_p4, %p518_p1 }
  0x19   : > { %p514_p0 = pneg %p513_p13 }
  0x1b   : > { %p521_p2 = pnand %p520_p3, %p514_p0 }
  0x1d   : > { %524 = shalt.err (!%p521_p2)
}
  0x1e   : > { %s538_s26 = smov 128   ;;  %s539_s27 = smov 8  }
  0x1f   : > { %474 = dma.hbm_to_vmem [thread:$0]  (!%p584_p5), %s633_s2, 1664, %s131_s15, [#allocation3], %s538_s26, %s538_s26, %s539_s27  }
  0x20   : > { %p639_p6 = scmp.ne.s32.totalorder %s637_s16, 0 }
  0x21   : > { %p640_p8 = scmp.eq.s32.totalorder (!%p639_p6), %s571_s13, 0 }
  0x22   : > { %160 = sbr.rel (%p639_p6) target bundleno = 666 (0x29a), region = 32 }
  0x29   : > { %530 = dma.done.wait (%p640_p8), [#allocation3], 1664   ;;  %p641_p7 = pmov %p640_p8 }
  0x2a   : > { %p186_p2 = scmp.lt.s32.totalorder %s571_s13, 3  ;;  %v540_v0 = vmov 0.0|0.0   ;;  %vm199_vm0 = vcmask 826368   ;;  %v206_v2 = vld [vmem:[#allocation2] sm:$0xff]  ;;  %v207_v3 = vld [vmem:[#allocation2 + $0x8] sm:$0xff]  ;;  %v208_v6 = vld [vmem:[#allocation2 + $0x10] sm:$0xff] }
  0x2b   : > { %532 = vsyncadd (%p641_p7), [#allocation3], 4294965632  ;;  %449 = vmatprep.subr.bf16.mxu0 %v540_v0  ;;  %v450_v5 = vpack.c.bf16 %v207_v3, %v206_v2  ;;  %v209_v7 = vld [vmem:[#allocation2 + $0x18] sm:$0xff]  ;;  %v210_v9 = vld [vmem:[#allocation2 + $0x20] sm:$0xff]  ;;  %vm541_vm1 = vmmov 0   ;;  %v542_v21 = vmov 0.0  }
  0x2c   : > { %s643_s13 = smov (!%p186_p2, %s571_s13), 3  ;;  %v453_v8 = vpack.c.bf16 %v209_v7, %v208_v6  ;;  %v211_v10 = vld [vmem:[#allocation2 + $0x28] sm:$0xff]  ;;  %v212_v12 = vld [vmem:[#allocation2 + $0x30] sm:$0xff]  ;;  %v213_v13 = vld [vmem:[#allocation2 + $0x38] sm:$0xff]  ;;  %446 = vmatprep.mubr.msk.f32.mxu0 %vm541_vm1, %v542_v21  ;;  %vm222_vm2 = vcmask 1044480   ;;  %s543_s10 = smov 1  }
  0x2d   : > { %s612_s30 = sshll.u32 %s643_s13, 3  ;;  %451 = vmatpush3.bf16.msra.mxu0 %v450_v5  ;;  %v456_v11 = vpack.c.bf16 %v211_v10, %v210_v9  ;;  %v459_v14 = vpack.c.bf16 %v213_v13, %v212_v12  ;;  %v214_v15 = vld [vmem:[#allocation2 + $0x40] sm:$0xff]  ;;  %v215_v16 = vld [vmem:[#allocation2 + $0x48] sm:$0xff]  ;;  %v216_v18 = vld [vmem:[#allocation2 + $0x50] sm:$0xff]  ;;  %s544_s11 = smov 127   ;;  %vm313_vm3 = vcmask 7168  }
  0x2e   : > { %s189_s6 = scalar_lea.vmem %s631_s0, %s612_s30  ;;  %452 = vmatprep.subr.bf16.mxu0 %v540_v0  ;;  %v462_v17 = vpack.c.bf16 %v215_v16, %v214_v15  ;;  %v217_v19 = vld [vmem:[#allocation2 + $0x58] sm:$0xff]  ;;  %v218_v22 = vld [vmem:[#allocation2 + $0x60] sm:$0x1f]  ;;  %s193_s9 = scalar_lea.vmem %s632_s1, %s612_s30 }
  0x2f   : > { %v198_v1 = vld [vmem:[%s189_s6] sm:$0xff]  ;;  %v465_v20 = vpack.c.bf16 %v217_v19, %v216_v18  ;;  %s197_s15 = scalar_lea.vmem %s634_s3, %s612_s30 }
  0x30   : > { %v200_v4 = vsel %vm199_vm0, %v198_v1, -inf  ;;  %v302_v27 = vld [vmem:[%s193_s9] sm:$0xff] }
  0x31   : > { %201 = vmax.xlane.f32.xlu0 %v200_v4  ;;  %454 = vmatpush3.bf16.msra.mxu0 %v453_v8 }
  0x32   : > { %455 = vmatprep.subr.bf16.mxu0 %v540_v0  ;;  %304 = vrot.lane.b32.xlu1 %v302_v27, %s543_s10 }
  0x35   : > { %457 = vmatpush3.bf16.msra.mxu0 %v456_v11 }
  0x36   : > { %458 = vmatprep.subr.bf16.mxu0 %v540_v0 }
  0x39   : > { %460 = vmatpush3.bf16.msra.mxu0 %v459_v14 }
  0x3a   : > { %461 = vmatprep.subr.bf16.mxu0 %v540_v0 }
  0x3d   : > { %463 = vmatpush3.bf16.msra.mxu0 %v462_v17 }
  0x3e   : > { %464 = vmatprep.subr.bf16.mxu0 %v540_v0 }
  0x41   : > { %466 = vmatpush3.bf16.msra.mxu0 %v465_v20 }
  0x42   : > { %444 = vmatprep.subr.mxu0 %v542_v21 }
  0x45   : > { %445 = vmatpush3.msk.msra.mxu0 %vm222_vm2, %v218_v22 }
  0xa4   : > { %v305_v32 = vpop.permute.xlu1 %304 }
  0xbe   : > { %v202_v23 = vpop.xlane.xlu0 %201 }
  0xbf   : > { %v203_v24 = vsub.f32 %v198_v1, %v202_v23 }
  0xc1   : > { %v204_v25 = vmul.f32 1.442695, %v203_v24 }
  0xc3   : > { %493 = vpow2.f32 %v204_v25 }
  0xcd   : > { %v494_v26 = vpop.eup %493 }
  0xce   : > { %447 = vmatmul.mubr.msk.f32.vlgmr.msra.gmra.mrb[0].mxu0 %vm199_vm0, %v494_v26 }
 0x1a1   : > { %v292_v28 = vpop.f32.mrb[0].mxu0 }
 0x1a2   : > { %297 = vrot.lane.b32.xlu0 %v292_v28, %s543_s10  ;;  %v448_v29 = vpop.f32.mrb[1].mxu0 }
 0x214   : > { %v298_v30 = vpop.permute.xlu0 %297 }
 0x215   : > { %495 = vrcp.f32 %v298_v30 }
 0x21f   : > { %v496_v31 = vpop.eup %495 }
 0x220   : > { %v301_v33 = vmul.f32 %v496_v31, %v292_v28 }
 0x222   : > { %v307_v34 = vsub.f32 %v301_v33, %v305_v32 }
 0x224   : > { %v308_v35 = vmul.f32 %v307_v34, %v307_v34 }
 0x226   : > { %310 = vrot.lane.b32.xlu1 %v308_v35, %s544_s11 }
 0x298   : > { %v311_v36 = vpop.permute.xlu1 %310 }
 0x299   : > { %314 = vst.msk [vmem:[%s197_s15] sm:$0xff] %vm313_vm3, %v311_v36 }
 0x29a PF: > { %s14_s12 = sadd.s32 1, %s535_s12  }
 0x29b   : > { %p11_p3 = scmp.ge.s32.totalorder %s14_s12, 6  }
 0x29d   :  { %13 = sbr.rel (!%p11_p3) target bundleno = 1 (0x1), region = 70 }
 0x2a4   :  { %334 = vsyncpa [#allocation3], 1 }
 0x2a5   :  { %336 = vsyncpa [#allocation3 + $0x1], 1 }

</bundles_post_ra>
